<compile_context>
chip_gen: v7x
topology: tpu7x:2x2x1
jax: 0.10.0
libtpu: 0.0.40
codegen_flags: <defaults>
</compile_context>

<pallas_src>
import functools

import numpy as np
import jax
import jax.numpy as jnp
from jax.experimental import pallas as pl
from jax.experimental.pallas import tpu as pltpu


def _round_up(n, m):
    return ((n + m - 1) // m) * m


# ----------------------------------------------------------------------------
# One-time parameter preparation (hoisted out of the per-forward hot path).
# Weight matrices are (D_in, D_out) / (D_in, 1); biases (1, D_out) / (1, 1)
# (torch nn.Linear weights pre-transposed).
# ----------------------------------------------------------------------------
def prepare_defer_adaptor_params(w_o, b_o, w_d, b_d, w_v, b_v,
                                 *, mxu_dtype=jnp.bfloat16):
    D_in, D_out = w_o.shape
    # Lane-dense padded output width. Feed the full 2x256 MXU on v6e/v7x; only
    # tiny layers fall back to 128 (v5e's 4x128 MXU is fine either way).
    tile_n = 128 if _round_up(D_out, 128) <= 128 else 256
    D_out_p = _round_up(D_out, tile_n)

    f32 = jnp.float32
    w_o_p = jnp.zeros((D_in, D_out_p), mxu_dtype).at[:, :D_out].set(
        w_o.astype(mxu_dtype))
    b_o_p = jnp.zeros((1, D_out_p), f32).at[:, :D_out].set(
        b_o.astype(f32).reshape(1, D_out))
    w_v_p = jnp.zeros((D_in, D_out_p), mxu_dtype).at[:, :D_out].set(
        w_v.astype(mxu_dtype))
    b_v_p = jnp.zeros((1, D_out_p), f32).at[:, :D_out].set(
        b_v.astype(f32).reshape(1, D_out))
    # Defer head padded to a lane-dense (D_in, 128) column block (col 0 live).
    w_d_p = jnp.zeros((D_in, 128), mxu_dtype).at[:, :1].set(w_d.astype(mxu_dtype))
    b_d_p = jnp.zeros((1, 128), f32).at[:, :1].set(b_d.astype(f32).reshape(1, 1))

    return dict(w_o_p=w_o_p, b_o_p=b_o_p, w_v_p=w_v_p, b_v_p=b_v_p,
                w_d_p=w_d_p, b_d_p=b_d_p,
                d_in=D_in, d_out=D_out, d_out_p=D_out_p, tile_n=tile_n,
                mxu_dtype=mxu_dtype)


# ----------------------------------------------------------------------------
# Gate kernel: values = query @ Wv + bv (tiled over D_out), defer scalar
# computed once (first n tile) from a lane-dense padded defer column block.
# ----------------------------------------------------------------------------
def _gate_kernel(q_ref, wv_ref, bv_ref, wd_ref, bd_ref, values_ref, defer_ref):
    q = q_ref[...]                                                # (B, D_in) bf16
    values_ref[...] = (jnp.dot(q, wv_ref[...],
                               preferred_element_type=jnp.float32)
                       + bv_ref[...])                             # (B, tile_n) f32

    @pl.when(pl.program_id(0) == 0)
    def _():
        logit = (jnp.dot(q, wd_ref[...],
                         preferred_element_type=jnp.float32)
                 + bd_ref[...])                                   # (B, 128)
        defer_ref[...] = jax.nn.sigmoid(logit[:, :1])             # (B, 1)


# ----------------------------------------------------------------------------
# Untrained path: plain tiled linear layer (no adaptor weights touched).
# ----------------------------------------------------------------------------
def _linear_kernel(x_ref, w_ref, b_ref, out_ref, *, mxu_dtype):
    x = x_ref[...].astype(mxu_dtype)                              # no-op if bf16
    acc = (jnp.dot(x, w_ref[...], preferred_element_type=jnp.float32)
           + b_ref[...])                                          # (tile_s, tile_n)
    out_ref[...] = acc.astype(out_ref.dtype)


# ----------------------------------------------------------------------------
# Trained path: tiled linear layer + defer/values blend.
# Grid = (n, b, s); per step the kernel sees a squeezed (tile_s, D_in) x-tile,
# a (D_in, tile_n) weight slab, the precomputed defer scalar (SMEM) and a
# (1, tile_n) values slab.
# ----------------------------------------------------------------------------
def _linear_blend_kernel(x_ref, w_ref, b_ref, defer_ref, values_ref, out_ref, *,
                         training, threshold, mxu_dtype):
    x = x_ref[...].astype(mxu_dtype)                              # no-op if bf16
    acc = (jnp.dot(x, w_ref[...], preferred_element_type=jnp.float32)
           + b_ref[...])                                          # (tile_s, tile_n)

    d = defer_ref[pl.program_id(1), 0]                            # f32 scalar (SMEM)
    vals = values_ref[...]                                        # (1, tile_n) f32

    if training:
        # Row pre-scaled by the gate -> only 1 mul + 1 add per output element.
        out = (1.0 - d) * acc + d * vals
    else:
        # Exact torch.where parity (also a single select per element).
        out = jnp.where(d >= threshold, vals, acc)

    out_ref[...] = out.astype(out_ref.dtype)


# ----------------------------------------------------------------------------
# Wrapper
# ----------------------------------------------------------------------------
def defer_adaptor_forward(x, prep, *, key_id=-1, untrained=False,
                          training=False, threshold=0.5, out_dtype=None):
    """Pallas implementation of DeferAdaptor.forward.

    `prep` comes from prepare_defer_adaptor_params (padded / bf16 weights).
    Returns (out, deferral_val); deferral_val is None on the untrained path
    (the torch module leaves self.deferral_val untouched there).
    """
    B, S, D_in = x.shape
    assert D_in == prep["d_in"]
    D_out, D_out_p, tile_n = prep["d_out"], prep["d_out_p"], prep["tile_n"]
    mxu_dtype = prep["mxu_dtype"]
    out_dtype = out_dtype if out_dtype is not None else x.dtype

    # ---- tiling: no sequence padding, ragged last s block -------------------------
    n_tiles = D_out_p // tile_n
    tile_s = min(512, _round_up(S, 8))       # v7x-safe zone (bf16 x, f32 out)
    s_tiles = pl.cdiv(S, tile_s)             # ragged tail handled by masked stores

    # x is re-streamed once per D_out tile; pre-cast to bf16 only when that
    # amortizes the one-time HBM round trip of the cast.
    if x.dtype != mxu_dtype and n_tiles > 1:
        x_in = x.astype(mxu_dtype)
    else:
        x_in = x

    # Weight slab outermost so it is never re-DMA'd across batch / seq tiles.
    grid = (n_tiles, B, s_tiles)
    x_spec = pl.BlockSpec((None, tile_s, D_in), lambda n, b, s: (b, s, 0))
    w_spec = pl.BlockSpec((D_in, tile_n), lambda n, b, s: (0, n))
    bias_spec = pl.BlockSpec((1, tile_n), lambda n, b, s: (0, n))
    out_spec = pl.BlockSpec((None, tile_s, tile_n), lambda n, b, s: (b, s, n))
    out_shape = jax.ShapeDtypeStruct((B, S, D_out_p), out_dtype)
    cparams = pltpu.CompilerParams(
        dimension_semantics=("parallel", "parallel", "parallel"),
        vmem_limit_bytes=64 * 1024 * 1024)

    # ---- untrained: pure linear, adaptor weights never DMA'd ----------------------
    if untrained:
        kernel = functools.partial(_linear_kernel, mxu_dtype=mxu_dtype)
        out_p = pl.pallas_call(
            kernel,
            out_shape=out_shape,
            grid_spec=pltpu.PrefetchScalarGridSpec(
                num_scalar_prefetch=0, grid=grid,
                in_specs=[x_spec, w_spec, bias_spec],
                out_specs=out_spec),
            compiler_params=cparams,
        )(x_in, prep["w_o_p"], prep["b_o_p"])
        out = out_p if D_out == D_out_p else out_p[:, :, :D_out]
        # TODO(synk): torch leaves self.deferral_val untouched on this path; we
        # return None instead of fabricating a value.
        return out, None

    # ---- token_to_edit = min(key_id, S - 1), torch-style negative indexing --------
    tok = min(int(key_id), S - 1)
    if tok < 0:
        if tok < -S:
            raise ValueError(f"key_id={key_id} out of range for seq_len={S}")
        tok += S
    query = x[:, tok, :].astype(mxu_dtype)                         # (B, D_in)

    # ---- gate kernel, tiled over D_out (no whole-weight-in-VMEM cliff) ------------
    q_spec = pl.BlockSpec((B, D_in), lambda n: (0, 0))
    wv_spec = pl.BlockSpec((D_in, tile_n), lambda n: (0, n))
    bv_spec = pl.BlockSpec((1, tile_n), lambda n: (0, n))
    wd_spec = pl.BlockSpec((D_in, 128), lambda n: (0, 0))
    bd_spec = pl.BlockSpec((1, 128), lambda n: (0, 0))
    values_out_spec = pl.BlockSpec((B, tile_n), lambda n: (0, n))
    defer_out_spec = pl.BlockSpec((B, 1), lambda n: (0, 0))        # resident output

    values_p, defer_val = pl.pallas_call(
        _gate_kernel,
        out_shape=(jax.ShapeDtypeStruct((B, D_out_p), jnp.float32),
                   jax.ShapeDtypeStruct((B, 1), jnp.float32)),
        grid_spec=pltpu.PrefetchScalarGridSpec(
            num_scalar_prefetch=0, grid=(n_tiles,),
            in_specs=[q_spec, wv_spec, bv_spec, wd_spec, bd_spec],
            out_specs=(values_out_spec, defer_out_spec)),
        compiler_params=pltpu.CompilerParams(
            dimension_semantics=("arbitrary",),
            vmem_limit_bytes=64 * 1024 * 1024),
    )(query, prep["w_v_p"], prep["b_v_p"], prep["w_d_p"], prep["b_d_p"])

    values_3d = values_p.reshape(B, 1, D_out_p)
    defer_spec = pl.BlockSpec(memory_space=pltpu.MemorySpace.SMEM)  # (B,1) scalars
    values_spec = pl.BlockSpec((None, 1, tile_n), lambda n, b, s: (b, 0, n))

    kernel = functools.partial(_linear_blend_kernel,
                               training=bool(training),
                               threshold=float(threshold),
                               mxu_dtype=mxu_dtype)
    out_p = pl.pallas_call(
        kernel,
        out_shape=out_shape,
        grid_spec=pltpu.PrefetchScalarGridSpec(
            num_scalar_prefetch=0, grid=grid,
            in_specs=[x_spec, w_spec, bias_spec, defer_spec, values_spec],
            out_specs=out_spec),
        compiler_params=cparams,
    )(x_in, prep["w_o_p"], prep["b_o_p"], defer_val, values_3d)

    out = out_p if D_out == D_out_p else out_p[:, :, :D_out]
    return out, defer_val


if __name__ == "__main__":
    # Small shapes consistent with the module: batch=2, seq=8, hidden=32.
    B, S, D_in, D_out = 2, 8, 32, 32
    key = jax.random.PRNGKey(0)
    ks = jax.random.split(key, 7)

    x = jax.random.normal(ks[0], (B, S, D_in), jnp.float32)
    # DeferAdaptor params: original Linear(D_in->D_out), defer Linear(D_in->1),
    # predict_values Linear(D_in->D_out). Weights stored as (in, out).
    w_o = 0.10 * jax.random.normal(ks[1], (D_in, D_out), jnp.float32)
    b_o = 0.10 * jax.random.normal(ks[2], (1, D_out), jnp.float32)
    w_d = 0.50 * jax.random.normal(ks[3], (D_in, 1), jnp.float32)
    b_d = 0.10 * jax.random.normal(ks[4], (1, 1), jnp.float32)
    w_v = 0.10 * jax.random.normal(ks[5], (D_in, D_out), jnp.float32)
    b_v = 0.10 * jax.random.normal(ks[6], (1, D_out), jnp.float32)

    # One-time (cached) param prep — hoisted out of the per-forward hot path.
    prep = prepare_defer_adaptor_params(w_o, b_o, w_d, b_d, w_v, b_v)

    # Plain-JAX reference using the same bf16-input / f32-accumulate math.
    bf = jnp.bfloat16
    layer_out = jnp.dot(x.astype(bf), w_o.astype(bf),
                        preferred_element_type=jnp.float32) + b_o
    tok = S - 1                      # min(-1, S-1) -> last token
    q = x[:, tok, :].astype(bf)
    dv = jax.nn.sigmoid(jnp.dot(q, w_d.astype(bf),
                                preferred_element_type=jnp.float32) + b_d)
    values = jnp.dot(q, w_v.astype(bf), preferred_element_type=jnp.float32) + b_v

    # --- eval path (torch.where branch), key_id = -1 as in __init__ ---
    out_eval, defer_val = defer_adaptor_forward(
        x, prep, key_id=-1, untrained=False, training=False)
    jax.block_until_ready((out_eval, defer_val))
    ref_eval = jnp.where(dv[:, :, None] >= 0.5, values[:, None, :], layer_out)
    assert np.allclose(np.asarray(out_eval), np.asarray(ref_eval),
                       atol=1e-4, rtol=1e-4)
    assert np.allclose(np.asarray(defer_val), np.asarray(dv), atol=1e-5)

    # --- training path (soft blend branch) ---
    out_train, _ = defer_adaptor_forward(
        x, prep, key_id=-1, untrained=False, training=True)
    jax.block_until_ready(out_train)
    ref_train = (dv[:, :, None] * values[:, None, :]
                 + (1.0 - dv[:, :, None]) * layer_out)
    assert np.allclose(np.asarray(out_train), np.asarray(ref_train),
                       atol=1e-4, rtol=1e-4)

    # --- untrained path (pass-through of the original layer) ---
    out_raw, dv_raw = defer_adaptor_forward(x, prep, key_id=-1, untrained=True)
    jax.block_until_ready(out_raw)
    assert dv_raw is None
    assert np.allclose(np.asarray(out_raw), np.asarray(layer_out),
                       atol=1e-4, rtol=1e-4)

    print("KERNEL_OK")
</pallas_src>

<mosaic_0001>
module attributes {stable_mosaic.version = 11 : i64} {
  func.func @_gate_kernel(%arg0: i32, %arg1: memref<2x32xbf16, #tpu.memory_space<vmem>>, %arg2: memref<32x128xbf16, #tpu.memory_space<vmem>>, %arg3: memref<1x128xf32, #tpu.memory_space<vmem>>, %arg4: memref<32x128xbf16, #tpu.memory_space<vmem>>, %arg5: memref<1x128xf32, #tpu.memory_space<vmem>>, %arg6: memref<2x128xf32, #tpu.memory_space<vmem>>, %arg7: memref<2x1xf32, #tpu.memory_space<vmem>>) attributes {dimension_semantics = [#tpu.dimension_semantics<arbitrary>], iteration_bounds = array<i64: 1>, scalar_prefetch = 0 : i64, scratch_operands = 0 : i64, tpu.core_type = #tpu.core_type<tc>, window_params = [{pipeline_mode = #tpu.pipeline_mode<synchronous>, transform_indices = @transform_0, window_bounds = array<i64: 2, 32>}, {transform_indices = @transform_1, window_bounds = array<i64: 32, 128>}, {transform_indices = @transform_2, window_bounds = array<i64: 1, 128>}, {pipeline_mode = #tpu.pipeline_mode<synchronous>, transform_indices = @transform_3, window_bounds = array<i64: 32, 128>}, {pipeline_mode = #tpu.pipeline_mode<synchronous>, transform_indices = @transform_4, window_bounds = array<i64: 1, 128>}, {transform_indices = @transform_5, window_bounds = array<i64: 2, 128>}, {pipeline_mode = #tpu.pipeline_mode<synchronous>, transform_indices = @transform_6, window_bounds = array<i64: 2, 1>}]} {
    %c0 = arith.constant 0 : index
    %c0_0 = arith.constant 0 : index
    %0 = vector.load %arg1[%c0, %c0_0] : memref<2x32xbf16, #tpu.memory_space<vmem>>, vector<2x32xbf16>
    %c0_1 = arith.constant 0 : index
    %c0_2 = arith.constant 0 : index
    %1 = vector.load %arg2[%c0_1, %c0_2] : memref<32x128xbf16, #tpu.memory_space<vmem>>, vector<32x128xbf16>
    %cst = arith.constant dense<0.000000e+00> : vector<2x128xf32>
    %2 = tpu.matmul %0, %1, %cst {dimension_numbers = #tpu.dot_dimension_numbers<[1], [0], [0], [1], [0, 0, 1, 1], [], []>} : vector<2x32xbf16>, vector<32x128xbf16>, vector<2x128xf32> -> vector<2x128xf32>
    %c0_3 = arith.constant 0 : index
    %c0_4 = arith.constant 0 : index
    %3 = vector.load %arg3[%c0_3, %c0_4] : memref<1x128xf32, #tpu.memory_space<vmem>>, vector<1x128xf32>
    %4 = vector.broadcast %3 : vector<1x128xf32> to vector<2x128xf32>
    %5 = arith.addf %2, %4 : vector<2x128xf32>
    %c0_5 = arith.constant 0 : index
    %c0_6 = arith.constant 0 : index
    %6 = vector.load %arg6[%c0_5, %c0_6] : memref<2x128xf32, #tpu.memory_space<vmem>>, vector<2x128xf32>
    tpu.vector_store %arg6[%c0_5, %c0_6], %5 {strides = array<i32>} : memref<2x128xf32, #tpu.memory_space<vmem>>, vector<2x128xf32>,
    %c0_i32 = arith.constant 0 : i32
    %7 = arith.cmpi eq, %arg0, %c0_i32 : i32
    %8 = arith.extui %7 : i1 to i32
    %c0_i32_7 = arith.constant 0 : i32
    %9 = arith.cmpi ne, %8, %c0_i32_7 : i32
    scf.if %9 {
      %c0_8 = arith.constant 0 : index
      %c0_9 = arith.constant 0 : index
      %10 = vector.load %arg4[%c0_8, %c0_9] : memref<32x128xbf16, #tpu.memory_space<vmem>>, vector<32x128xbf16>
      %cst_10 = arith.constant dense<0.000000e+00> : vector<2x128xf32>
      %11 = tpu.matmul %0, %10, %cst_10 {dimension_numbers = #tpu.dot_dimension_numbers<[1], [0], [0], [1], [0, 0, 1, 1], [], []>} : vector<2x32xbf16>, vector<32x128xbf16>, vector<2x128xf32> -> vector<2x128xf32>
      %c0_11 = arith.constant 0 : index
      %c0_12 = arith.constant 0 : index
      %12 = vector.load %arg5[%c0_11, %c0_12] : memref<1x128xf32, #tpu.memory_space<vmem>>, vector<1x128xf32>
      %13 = vector.broadcast %12 : vector<1x128xf32> to vector<2x128xf32>
      %14 = arith.addf %11, %13 : vector<2x128xf32>
      %15 = vector.extract_strided_slice %14 {offsets = [0, 0], sizes = [2, 1], strides = [1, 1]} : vector<2x128xf32> to vector<2x1xf32>
      %16 = arith.negf %15 : vector<2x1xf32>
      %17 = math.exp %16 : vector<2x1xf32>
      %cst_13 = arith.constant 1.000000e+00 : f32
      %18 = vector.broadcast %cst_13 : f32 to vector<2x1xf32>
      %19 = arith.addf %18, %17 : vector<2x1xf32>
      %20 = arith.divf %18, %19 : vector<2x1xf32>
      %c0_14 = arith.constant 0 : index
      %c0_15 = arith.constant 0 : index
      %21 = vector.load %arg7[%c0_14, %c0_15] : memref<2x1xf32, #tpu.memory_space<vmem>>, vector<2x1xf32>
      tpu.vector_store %arg7[%c0_14, %c0_15], %20 {strides = array<i32>} : memref<2x1xf32, #tpu.memory_space<vmem>>, vector<2x1xf32>,
    } else {
    }
    return
  }
  func.func @transform_0(%arg0: i32) -> (i32, i32) {
    %c0_i32 = arith.constant 0 : i32
    %c0_i32_0 = arith.constant 0 : i32
    %c0_i32_1 = arith.constant 0 : i32
    return %c0_i32, %c0_i32_0 : i32, i32
  }
  func.func @transform_1(%arg0: i32) -> (i32, i32) {
    %c0_i32 = arith.constant 0 : i32
    %c0_i32_0 = arith.constant 0 : i32
    return %c0_i32, %arg0 : i32, i32
  }
  func.func @transform_2(%arg0: i32) -> (i32, i32) {
    %c0_i32 = arith.constant 0 : i32
    %c0_i32_0 = arith.constant 0 : i32
    return %c0_i32, %arg0 : i32, i32
  }
  func.func @transform_3(%arg0: i32) -> (i32, i32) {
    %c0_i32 = arith.constant 0 : i32
    %c0_i32_0 = arith.constant 0 : i32
    %c0_i32_1 = arith.constant 0 : i32
    return %c0_i32, %c0_i32_0 : i32, i32
  }
  func.func @transform_4(%arg0: i32) -> (i32, i32) {
    %c0_i32 = arith.constant 0 : i32
    %c0_i32_0 = arith.constant 0 : i32
    %c0_i32_1 = arith.constant 0 : i32
    return %c0_i32, %c0_i32_0 : i32, i32
  }
  func.func @transform_5(%arg0: i32) -> (i32, i32) {
    %c0_i32 = arith.constant 0 : i32
    %c0_i32_0 = arith.constant 0 : i32
    return %c0_i32, %arg0 : i32, i32
  }
  func.func @transform_6(%arg0: i32) -> (i32, i32) {
    %c0_i32 = arith.constant 0 : i32
    %c0_i32_0 = arith.constant 0 : i32
    %c0_i32_1 = arith.constant 0 : i32
    return %c0_i32, %c0_i32_0 : i32, i32
  }
}

</mosaic_0001>

<bundles_post_ra>
// kernel: tpu_custom_call.1
= control target key start
LH: loop header
LB: loop body
LE: loop exit
PB: predicated region body
PF: predicated region fallthrough
CT: control target
= control target key end

     0   :  { %12 = vsyncpa [#allocation3], 0  ;;  %s606_s0 = inlined_call_operand.hbm [shape: bf16[2,32], index: 0, kind: input, shape index: {}]   ;;  %s607_s1 = inlined_call_operand.hbm [shape: bf16[32,128], index: 1, kind: input, shape index: {}]   ;;  %s608_s2 = inlined_call_operand.hbm [shape: f32[1,128], index: 2, kind: input, shape index: {}]   ;;  %s609_s3 = inlined_call_operand.hbm [shape: bf16[32,128], index: 3, kind: input, shape index: {}]   ;;  %s610_s4 = inlined_call_operand.hbm [shape: f32[1,128], index: 4, kind: input, shape index: {}]   ;;  %s611_s5 = inlined_call_operand.hbm [shape: f32[2,128], index: 5, kind: output, shape index: {0}]   ;;  %s612_s6 = inlined_call_operand.hbm [shape: f32[2,1], index: 6, kind: output, shape index: {1}]  }
   0x1   :  { %13 = vsyncpa [#allocation6], 0 }
   0x2   :  { %14 = vsyncpa [#allocation9], 0 }
   0x3   :  { %15 = vsyncpa [#allocation4], 0 }
   0x4   :  { %16 = vsyncpa [#allocation13], 0  ;;  %s476_s21 = smov [#allocation5]   ;;  %s312_s25 = scalar_lea.hbm %s607_s1, 256 }
   0x5   :  { %s32_s22 = sshll.u32 %s476_s21, 4  ;;  %p313_p0 = scmp.ne.s32.totalorder %s607_s1, %s312_s25  ;;  %s33_s22 = int_to_ptr.vmem [resolvable:$true] %s32_s22 }
   0x6   :  { %p316_p1 = scmp.lt.u32.totalorder %s312_s25, %s607_s1 }
   0x8   :  { %p318_p2 = pnand %p316_p1, %p313_p0 }
   0xa   :  { %321 = shalt.err (!%p318_p2)
}
   0xb   :  { %s322_s30 = scalar_lea.vmem %s33_s22, 256  ;;  %p327_p4 = scmp.lt.s32.totalorder %s33_s22, %s33_s22 }
   0xc   :  { %p323_p3 = scmp.ne.s32.totalorder %s33_s22, %s322_s30  ;;  %p328_p5 = scmp.lt.s32.totalorder %s322_s30, %s322_s30 }
   0xe   :  { %p329_p6 = por %p328_p5, %p327_p4 }
  0x10   :  { %p330_p7 = pnand %p329_p6, %p323_p3 }
  0x12   :  { %333 = shalt.err (!%p330_p7)
}
  0x13   :  { %s477_s7 = smov 64   ;;  %s478_s8 = smov 4  }
  0x14   :  { %38 = dma.hbm_to_vmem [thread:$0]  %s607_s1, 256, %s33_s22, [#allocation6], %s477_s7, %s477_s7, %s478_s8  }
  0x15   :  { %s479_s11 = smov [#allocation8]   ;;  %s480_s13 = smov [#allocation2]  }
  0x16   :  { %s54_s12 = sshll.u32 %s479_s11, 4  ;;  %s23_s14 = sshll.u32 %s480_s13, 4  ;;  %s55_s12 = int_to_ptr.vmem [resolvable:$true] %s54_s12  ;;  %s24_s14 = int_to_ptr.vmem [resolvable:$true] %s23_s14 }
  0x17   :  { %s334_s17 = scalar_lea.hbm %s609_s3, 256 }
  0x18   :  { %p335_p8 = scmp.ne.s32.totalorder %s609_s3, %s334_s17  ;;  %p338_p9 = scmp.lt.u32.totalorder %s334_s17, %s609_s3 }
  0x1a   :  { %p340_p10 = pnand %p338_p9, %p335_p8 }
  0x1c   :  { %343 = shalt.err (!%p340_p10)
}
  0x1d   :  { %s344_s1 = scalar_lea.vmem %s55_s12, 256  ;;  %p349_p12 = scmp.lt.s32.totalorder %s55_s12, %s55_s12 }
  0x1e   :  { %p345_p11 = scmp.ne.s32.totalorder %s55_s12, %s344_s1  ;;  %p350_p13 = scmp.lt.s32.totalorder %s344_s1, %s344_s1 }
  0x20   :  { %p351_p0 = por %p350_p13, %p349_p12 }
  0x22   :  { %p352_p1 = pnand %p351_p0, %p345_p11 }
  0x24   :  { %355 = shalt.err (!%p352_p1)
}
  0x25   :  { %60 = dma.hbm_to_vmem [thread:$0]  %s609_s3, 256, %s55_s12, [#allocation9], %s477_s7, %s477_s7, %s478_s8  }
  0x26   :  { %s356_s26 = scalar_lea.hbm %s606_s0, 16 }
  0x27   :  { %p357_p2 = scmp.ne.s32.totalorder %s606_s0, %s356_s26  ;;  %p360_p3 = scmp.lt.u32.totalorder %s356_s26, %s606_s0 }
  0x29   :  { %p362_p4 = pnand %p360_p3, %p357_p2 }
  0x2b   :  { %365 = shalt.err (!%p362_p4)
}
  0x2c   :  { %s366_s9 = scalar_lea.vmem %s24_s14, 16  ;;  %s370_s10 = scalar_lea.vmem %s24_s14, 32 }
  0x2d   :  { %p367_p5 = scmp.ne.s32.totalorder %s24_s14, %s366_s9  ;;  %p371_p6 = scmp.lt.s32.totalorder %s24_s14, %s24_s14 }
  0x2e   :  { %p372_p7 = scmp.lt.s32.totalorder %s370_s10, %s366_s9 }
  0x30   :  { %p373_p8 = por %p372_p7, %p371_p6 }
  0x32   :  { %p374_p9 = pnand %p373_p8, %p367_p5 }
  0x34   :  { %377 = shalt.err (!%p374_p9)
}
  0x35   :  { %26 = dma.hbm_to_vmem [thread:$0]  %s606_s0, 16, %s24_s14, [#allocation3]  }
  0x36   :  { %s481_s8 = smov [#allocation7]   ;;  %s482_s12 = smov [#allocation10]  }
  0x37   :  { %s45_s11 = sshll.u32 %s481_s8, 4  ;;  %s67_s13 = sshll.u32 %s482_s12, 4  ;;  %s46_s11 = int_to_ptr.vmem [resolvable:$true] %s45_s11  ;;  %s68_s13 = int_to_ptr.vmem [resolvable:$true] %s67_s13 }
  0x38   :  { %s378_s17 = scalar_lea.hbm %s608_s2, 16 }
  0x39   :  { %p379_p10 = scmp.ne.s32.totalorder %s608_s2, %s378_s17  ;;  %p382_p11 = scmp.lt.u32.totalorder %s378_s17, %s608_s2 }
  0x3b   :  { %p384_p12 = pnand %p382_p11, %p379_p10 }
  0x3d   :  { %387 = shalt.err (!%p384_p12)
}
  0x3e   :  { %s388_s0 = scalar_lea.vmem %s46_s11, 16  ;;  %s392_s14 = scalar_lea.vmem %s46_s11, 32 }
  0x3f   :  { %p389_p13 = scmp.ne.s32.totalorder %s46_s11, %s388_s0  ;;  %p393_p0 = scmp.lt.s32.totalorder %s46_s11, %s46_s11 }
  0x40   :  { %p394_p1 = scmp.lt.s32.totalorder %s392_s14, %s388_s0 }
  0x42   :  { %p395_p2 = por %p394_p1, %p393_p0 }
  0x44   :  { %p396_p3 = pnand %p395_p2, %p389_p13 }
  0x46   :  { %399 = shalt.err (!%p396_p3)
}
  0x47   :  { %48 = dma.hbm_to_vmem [thread:$0]  %s608_s2, 16, %s46_s11, [#allocation6]  }
  0x48   :  { %s400_s25 = scalar_lea.hbm %s610_s4, 16 }
  0x49   :  { %p401_p4 = scmp.ne.s32.totalorder %s610_s4, %s400_s25  ;;  %p404_p5 = scmp.lt.u32.totalorder %s400_s25, %s610_s4 }
  0x4b   :  { %p406_p6 = pnand %p404_p5, %p401_p4 }
  0x4d   :  { %409 = shalt.err (!%p406_p6)
}
  0x4e   :  { %s410_s30 = scalar_lea.vmem %s68_s13, 16  ;;  %s414_s9 = scalar_lea.vmem %s68_s13, 32 }
  0x4f   :  { %p411_p7 = scmp.ne.s32.totalorder %s68_s13, %s410_s30  ;;  %p415_p8 = scmp.lt.s32.totalorder %s68_s13, %s68_s13 }
  0x50   :  { %p416_p9 = scmp.lt.s32.totalorder %s414_s9, %s410_s30 }
  0x52   :  { %p417_p10 = por %p416_p9, %p415_p8 }
  0x54   :  { %p418_p11 = pnand %p417_p10, %p411_p7 }
  0x56   :  { %421 = shalt.err (!%p418_p11)
}
  0x57   :  { %70 = dma.hbm_to_vmem [thread:$0]  %s610_s4, 16, %s68_s13, [#allocation9]  }
  0x58   :  { %466 = dma.done.wait [#allocation3], 16  }
  0x59   :  { %467 = vsyncadd [#allocation3], 4294967280 }
  0x5a   :  { %468 = dma.done.wait [#allocation6], 272  }
  0x5b   :  { %469 = vsyncadd [#allocation6], 4294967024 }
  0x5c   :  { %470 = dma.done.wait [#allocation9], 272  }
  0x5d   :  { %471 = vsyncadd [#allocation9], 4294967024  ;;  %v483_v0 = vmov 0.0   ;;  %vm484_vm0 = vmmov 0   ;;  %v304_v1 = vld [vmem:[#allocation8] sm:$0xff]   ;;  %v305_v2 = vld [vmem:[#allocation8 + $0x8] sm:$0xff]  }
  0x5e   :  { %285 = vmatprep.subr.bf16.mxu1 %v483_v0  ;;  %289 = vmatprep.mubr.msk.bf16.mxu1 %vm484_vm0, %v483_v0  ;;  %v306_v3 = vld [vmem:[#allocation5] sm:$0xff]   ;;  %v307_v4 = vld [vmem:[#allocation5 + $0x8] sm:$0xff]   ;;  %v87_v5 = vld [vmem:[#allocation2] sm:$0x1]  ;;  %vm111_vm1 = vcmask 261120   ;;  %s485_s4 = smov [#allocation11]  }
  0x5f   :  { %277 = vmatprep.subr.bf16.mxu0 %v483_v0  ;;  %281 = vmatprep.mubr.msk.bf16.mxu0 %vm484_vm0, %v483_v0  ;;  %v266_v6 = vld [vmem:[#allocation10] ss:$0 sm:$0xff]  ;;  %v262_v10 = vld [vmem:[#allocation7] ss:$0 sm:$0xff]  ;;  %s237_s3 = sshll.u32 %s485_s4, 4  ;;  %s238_s3 = int_to_ptr.vmem [resolvable:$true] %s237_s3 }
  0x60   :  { %286 = vmatpush3.bf16.msra.mxu1 %v304_v1  ;;  %278 = vmatpush3.bf16.msra.mxu0 %v306_v3  ;;  %s422_s7 = scalar_lea.vmem %s238_s3, 32  ;;  %p427_p13 = scmp.lt.s32.totalorder %s238_s3, %s238_s3 }
  0x61   :  { %287 = vmatprep.subr.bf16.mxu1 %v483_v0  ;;  %279 = vmatprep.subr.bf16.mxu0 %v483_v0  ;;  %p423_p12 = scmp.ne.s32.totalorder %s238_s3, %s422_s7  ;;  %p428_p0 = scmp.lt.s32.totalorder %s422_s7, %s422_s7 }
  0x63   :  { %p429_p1 = por %p428_p0, %p427_p13 }
  0x64   :  { %288 = vmatpush3.bf16.msra.mxu1 %v305_v2  ;;  %280 = vmatpush3.bf16.msra.mxu0 %v307_v4 }
  0x65   :  { %p430_p2 = pnand %p429_p1, %p423_p12 }
  0x67   :  { %290 = vmatmul.mubr.msk.bf16.vlgmr.msra.gmra.mrb[0].mxu1 %vm111_vm1, %v87_v5  ;;  %282 = vmatmul.mubr.msk.bf16.vlgmr.msra.gmra.mrb[0].mxu0 %vm111_vm1, %v87_v5 }
 0x13a   :  { %v217_v7 = vpop.f32.mrb[0].mxu1  ;;  %v149_v14 = vpop.f32.mrb[0].mxu0 }
 0x13b   :  { %v218_v8 = vadd.f32 %v266_v6, %v217_v7  ;;  %v291_v9 = vpop.f32.mrb[1].mxu1  ;;  %v150_v15 = vadd.f32 %v262_v10, %v149_v14  ;;  %v283_v16 = vpop.f32.mrb[1].mxu0 }
 0x13c   :  { %v220_v11 = vpop.f32.mrb[2].mxu1  ;;  %v152_v17 = vpop.f32.mrb[2].mxu0 }
 0x13d   :  { %v270_v12 = vmul.f32 -1.442695, %v218_v8  ;;  %v292_v13 = vpop.f32.mrb[3].mxu1  ;;  %155 = vst [vmem:[#allocation11] sm:$0x3] %v150_v15  ;;  %v284_v18 = vpop.f32.mrb[3].mxu0 }
 0x13f   :  { %308 = vpow2.f32 %v270_v12 }
 0x140   :  { %433 = shalt.err (!%p430_p2)
}
 0x141   :  { %s434_s12 = scalar_lea.hbm %s611_s5, 32 }
 0x142   :  { %p435_p3 = scmp.ne.s32.totalorder %s611_s5, %s434_s12  ;;  %p438_p4 = scmp.lt.u32.totalorder %s434_s12, %s611_s5 }
 0x144   :  { %p440_p5 = pnand %p438_p4, %p435_p3 }
 0x146   :  { %443 = shalt.err (!%p440_p5)
}
 0x147   :  { %240 = dma.vmem_to_hbm [thread:$0]  %s238_s3, 32, %s611_s5, [#allocation4]   ;;  %vm229_vm2 = vcmask 1024  }
 0x148   :  { %s486_s20 = smov [#allocation12]  }
 0x149   :  { %v309_v19 = vpop.eup %308  ;;  %s247_s21 = sshll.u32 %s486_s20, 4  ;;  %s248_s21 = int_to_ptr.vmem [resolvable:$true] %s247_s21 }
 0x14a   :  { %v226_v20 = vadd.f32 1.0, %v309_v19  ;;  %s444_s0 = scalar_lea.vmem %s248_s21, 32  ;;  %p449_p7 = scmp.lt.s32.totalorder %s248_s21, %s248_s21 }
 0x14b   :  { %p445_p6 = scmp.ne.s32.totalorder %s248_s21, %s444_s0  ;;  %p450_p8 = scmp.lt.s32.totalorder %s444_s0, %s444_s0 }
 0x14c   :  { %310 = vrcp.f32 %v226_v20 }
 0x14d   :  { %p451_p9 = por %p450_p8, %p449_p7 }
 0x14f   :  { %p452_p10 = pnand %p451_p9, %p445_p6 }
 0x156   :  { %v311_v21 = vpop.eup %310 }
 0x157   :  { %230 = vst.msk [vmem:[#allocation12] sm:$0x3] %vm229_vm2, %v311_v21 }
 0x158   :  { %455 = shalt.err (!%p452_p10)
}
 0x159   :  { %s456_s5 = scalar_lea.hbm %s612_s6, 32 }
 0x15a   :  { %p457_p11 = scmp.ne.s32.totalorder %s612_s6, %s456_s5  ;;  %p460_p12 = scmp.lt.u32.totalorder %s456_s5, %s612_s6 }
 0x15c   :  { %p462_p13 = pnand %p460_p12, %p457_p11 }
 0x15e   :  { %465 = shalt.err (!%p462_p13)
}
 0x15f   :  { %250 = dma.vmem_to_hbm [thread:$0]  %s248_s21, 32, %s612_s6, [#allocation13]  }
 0x160   :  { %472 = dma.done.wait [#allocation4], 32  }
 0x161   :  { %473 = vsyncadd [#allocation4], 4294967264 }
 0x162   :  { %474 = dma.done.wait [#allocation13], 32  }
 0x163   :  { %475 = vsyncadd [#allocation13], 4294967264 }
 0x164   :  { %257 = vsyncpa [#allocation3], 1 }
 0x165   :  { %258 = vsyncpa [#allocation6], 1 }
 0x166   :  { %259 = vsyncpa [#allocation9], 1 }
 0x167   :  { %260 = vsyncpa [#allocation4], 1 }
 0x168   :  { %261 = vsyncpa [#allocation13], 1 }

</bundles_post_ra>
